<compile_context>
chip_gen: v5e
topology: v5e:2x2
jax: 0.10.0
libtpu: 0.0.40
codegen_flags: <defaults>
</compile_context>

<pallas_src>
import jax
import jax.numpy as jnp
from jax import lax
from jax.experimental import pallas as pl
from jax.experimental.pallas import tpu as pltpu

_INV_SQRT2 = 0.7071067811865476
_LANE = 128
_SUBLANE = 8
_MAX_B_TILE = 1024   # rows per grid step, cap (VMEM is a non-issue at this size)
_MIN_B_TILE = 256    # keep ~0.35us per-step overhead amortized
_TARGET_GRID = 4     # >=4 steps: dual-TC sharding (v7x) + pipeline overlap


def _round_up(x, m):
    return (x + m - 1) // m * m


def _cdiv(a, b):
    return -(-a // b)


def _gelu_exact(y):
    # PyTorch nn.GELU default: 0.5 * y * (1 + erf(y / sqrt(2)))
    return 0.5 * y * (1.0 + lax.erf(y * jnp.float32(_INV_SQRT2)))


def _embed_kernel(x_ref, w_ref, b_ref, o_ref):
    # x_ref: (tile_r, k_in)  w_ref: (k_in, d_out)  b_ref: (1, d_out)
    # o_ref: (tile_r, d_out)
    y = jnp.dot(x_ref[...], w_ref[...],
                preferred_element_type=jnp.float32,
                precision=lax.Precision.HIGHEST)     # f32 parity with PyTorch
    y = y + b_ref[...]
    o_ref[...] = _gelu_exact(y).astype(o_ref.dtype)


def _choose_tile(rows):
    """Rows per grid step: multiple of 8, aims for >= _TARGET_GRID steps at
    large row counts, avoids near-empty trailing tiles, caps at _MAX_B_TILE."""
    rows8 = _round_up(max(rows, 1), _SUBLANE)
    tile = _round_up(_cdiv(rows8, _TARGET_GRID), _SUBLANE)
    tile = max(min(tile, _MAX_B_TILE), _MIN_B_TILE)
    n_tiles = _cdiv(rows8, tile)
    tile = _round_up(_cdiv(rows8, n_tiles), _SUBLANE)   # re-balance tail padding
    return min(tile, rows8)


def prepare_params(weight, bias):
    """One-time (outside the hot path) param prep from PyTorch nn.Linear layout.

    weight: (D, C+1) f32 (out, in), bias: (D,) f32.
    If D divides 128, builds a block-diagonal row-packed weight so P = 128/D
    batch rows share one 128-lane output row.
    """
    D, K = weight.shape                       # K = C + 1
    Kp = _round_up(K, _SUBLANE)               # pad contraction dim to sublane
    w_t = jnp.zeros((Kp, D), jnp.float32).at[:K, :].set(
        jnp.transpose(weight).astype(jnp.float32))
    b = bias.astype(jnp.float32)
    P = _LANE // D if (D <= _LANE and _LANE % D == 0) else 1
    if P > 1:
        w_mat = jnp.kron(jnp.eye(P, dtype=jnp.float32), w_t)   # (P*Kp, 128) block-diag
        b_row = jnp.tile(b, P)[None, :]                        # (1, 128)
    else:
        w_mat = w_t                                            # (Kp, D)
        b_row = b[None, :]                                     # (1, D)
    return {"P": P, "K": K, "Kp": Kp, "D": D, "w": w_mat, "b": b_row}


def source_specific_embedding_0d(values, avail_mask, params):
    """values: (B, C), avail_mask: (B,), params from prepare_params.
    Returns (B, 1, D) f32 = GELU(concat(values, mask) @ W.T + b)[:, None, :]."""
    B, C = values.shape
    P, K, Kp, D = params["P"], params["K"], params["Kp"], params["D"]
    assert K == C + 1, (K, C)
    w_mat, b_row = params["w"], params["b"]
    k_in, d_out = w_mat.shape

    # Fuse the availability-mask column host-side (a few bytes per row).
    x = jnp.concatenate(
        [values.astype(jnp.float32),
         avail_mask.reshape(B, 1).astype(jnp.float32)], axis=1)     # (B, K)

    rows_needed = _cdiv(B, P)              # rows after packing
    tile_r = _choose_tile(rows_needed)
    rows = _round_up(rows_needed, tile_r)
    Bp = rows * P

    # Zero-pad batch rows (dropped below) and contraction cols K -> Kp.
    x = jnp.pad(x, ((0, Bp - B), (0, Kp - K)))
    if P > 1:
        x = x.reshape(rows, P * Kp)        # contiguous row packing (free)

    out = pl.pallas_call(
        _embed_kernel,
        out_shape=jax.ShapeDtypeStruct((rows, d_out), jnp.float32),
        grid_spec=pltpu.PrefetchScalarGridSpec(
            num_scalar_prefetch=0,
            grid=(rows // tile_r,),
            in_specs=[
                pl.BlockSpec((tile_r, k_in), lambda i: (i, 0)),   # packed rows
                pl.BlockSpec((k_in, d_out), lambda i: (0, 0)),    # weight (resident)
                pl.BlockSpec((1, d_out), lambda i: (0, 0)),       # bias (resident)
            ],
            out_specs=pl.BlockSpec((tile_r, d_out), lambda i: (i, 0)),
        ),
        compiler_params=pltpu.CompilerParams(
            dimension_semantics=("parallel",)),
    )(x, w_mat, b_row)

    if P > 1:
        out = out.reshape(Bp, D)           # contiguous un-packing (free)
    return out[:B, None, :]                # drop batch padding, add patch axis


if __name__ == "__main__":
    # Small shapes consistent with the module: B=8 batch, C=4 channels, values_dim=32.
    B, C, D = 8, 4, 32
    key = jax.random.PRNGKey(0)
    k_vals, k_mask, k_w, k_b = jax.random.split(key, 4)

    values = jax.random.normal(k_vals, (B, C), dtype=jnp.float32)
    avail_mask = (jax.random.uniform(k_mask, (B,)) > 0.5).astype(jnp.float32)

    # Deterministic nn.Linear(C+1, D)-style init: U(-1/sqrt(fan_in), 1/sqrt(fan_in)).
    fan_in = C + 1
    bound = 1.0 / float(fan_in) ** 0.5
    weight = jax.random.uniform(k_w, (D, fan_in), minval=-bound, maxval=bound,
                                dtype=jnp.float32)   # PyTorch layout (out, in)
    bias = jax.random.uniform(k_b, (D,), minval=-bound, maxval=bound,
                              dtype=jnp.float32)

    # One-time param prep (transpose / pad / block-diag pack) outside the hot path.
    params = prepare_params(weight, bias)

    out = source_specific_embedding_0d(values, avail_mask, params)
    out = jax.block_until_ready(out)

    # Reference check in plain JAX (same math as the PyTorch module), f32 matmul.
    x_ref = jnp.concatenate([values, avail_mask[:, None]], axis=1)   # (B, C+1)
    y_ref = jnp.dot(x_ref, weight.T, precision=lax.Precision.HIGHEST) + bias
    ref = (0.5 * y_ref * (1.0 + lax.erf(y_ref * _INV_SQRT2)))[:, None, :]

    assert out.shape == (B, 1, D), out.shape
    err = float(jnp.max(jnp.abs(out - ref)))
    assert err < 1e-4, err

    print("KERNEL_OK")
</pallas_src>

<mosaic_0001>
module attributes {stable_mosaic.version = 11 : i64} {
  func.func @_embed_kernel(%arg0: i32, %arg1: memref<8x32xf32, #tpu.memory_space<vmem>>, %arg2: memref<32x128xf32, #tpu.memory_space<vmem>>, %arg3: memref<1x128xf32, #tpu.memory_space<vmem>>, %arg4: memref<8x128xf32, #tpu.memory_space<vmem>>) attributes {dimension_semantics = [#tpu.dimension_semantics<parallel>], iteration_bounds = array<i64: 1>, scalar_prefetch = 0 : i64, scratch_operands = 0 : i64, tpu.core_type = #tpu.core_type<tc>, window_params = [{transform_indices = @transform_0, window_bounds = array<i64: 8, 32>}, {pipeline_mode = #tpu.pipeline_mode<synchronous>, transform_indices = @transform_1, window_bounds = array<i64: 32, 128>}, {pipeline_mode = #tpu.pipeline_mode<synchronous>, transform_indices = @transform_2, window_bounds = array<i64: 1, 128>}, {transform_indices = @transform_3, window_bounds = array<i64: 8, 128>}]} {
    %c0 = arith.constant 0 : index
    %c0_0 = arith.constant 0 : index
    %0 = vector.load %arg1[%c0, %c0_0] : memref<8x32xf32, #tpu.memory_space<vmem>>, vector<8x32xf32>
    %c0_1 = arith.constant 0 : index
    %c0_2 = arith.constant 0 : index
    %1 = vector.load %arg2[%c0_1, %c0_2] : memref<32x128xf32, #tpu.memory_space<vmem>>, vector<32x128xf32>
    %cst = arith.constant dense<0.000000e+00> : vector<8x128xf32>
    %2 = tpu.matmul %0, %1, %cst {dimension_numbers = #tpu.dot_dimension_numbers<[1], [0], [0], [1], [0, 0, 1, 1], [], []>, precision = #tpu.contract_precision<fp32>} : vector<8x32xf32>, vector<32x128xf32>, vector<8x128xf32> -> vector<8x128xf32>
    %c0_3 = arith.constant 0 : index
    %c0_4 = arith.constant 0 : index
    %3 = vector.load %arg3[%c0_3, %c0_4] : memref<1x128xf32, #tpu.memory_space<vmem>>, vector<1x128xf32>
    %4 = vector.broadcast %3 : vector<1x128xf32> to vector<8x128xf32>
    %5 = arith.addf %2, %4 : vector<8x128xf32>
    %cst_5 = arith.constant 5.000000e-01 : f32
    %6 = vector.broadcast %cst_5 : f32 to vector<8x128xf32>
    %7 = arith.mulf %6, %5 : vector<8x128xf32>
    %cst_6 = arith.constant 0.707106769 : f32
    %8 = vector.broadcast %cst_6 : f32 to vector<8x128xf32>
    %9 = arith.mulf %5, %8 : vector<8x128xf32>
    %10 = math.erf %9 : vector<8x128xf32>
    %cst_7 = arith.constant 1.000000e+00 : f32
    %11 = vector.broadcast %cst_7 : f32 to vector<8x128xf32>
    %12 = arith.addf %11, %10 : vector<8x128xf32>
    %13 = arith.mulf %7, %12 : vector<8x128xf32>
    %c0_8 = arith.constant 0 : index
    %c0_9 = arith.constant 0 : index
    %14 = vector.load %arg4[%c0_8, %c0_9] : memref<8x128xf32, #tpu.memory_space<vmem>>, vector<8x128xf32>
    tpu.vector_store %arg4[%c0_8, %c0_9], %13 {strides = array<i32>} : memref<8x128xf32, #tpu.memory_space<vmem>>, vector<8x128xf32>,
    return
  }
  func.func @transform_0(%arg0: i32) -> (i32, i32) {
    %c0_i32 = arith.constant 0 : i32
    %c0_i32_0 = arith.constant 0 : i32
    return %arg0, %c0_i32 : i32, i32
  }
  func.func @transform_1(%arg0: i32) -> (i32, i32) {
    %c0_i32 = arith.constant 0 : i32
    %c0_i32_0 = arith.constant 0 : i32
    %c0_i32_1 = arith.constant 0 : i32
    return %c0_i32, %c0_i32_0 : i32, i32
  }
  func.func @transform_2(%arg0: i32) -> (i32, i32) {
    %c0_i32 = arith.constant 0 : i32
    %c0_i32_0 = arith.constant 0 : i32
    %c0_i32_1 = arith.constant 0 : i32
    return %c0_i32, %c0_i32_0 : i32, i32
  }
  func.func @transform_3(%arg0: i32) -> (i32, i32) {
    %c0_i32 = arith.constant 0 : i32
    %c0_i32_0 = arith.constant 0 : i32
    return %arg0, %c0_i32 : i32, i32
  }
}

</mosaic_0001>

<bundles_post_ra>
// kernel: tpu_custom_call.1
= control target key start
LH: loop header
LB: loop body
LE: loop exit
PB: predicated region body
PF: predicated region fallthrough
CT: control target
= control target key end

     0   :  { %8 = vsyncpa [#allocation3], 0  ;;  %s430_s0 = inlined_call_operand.hbm [shape: f32[8,32], index: 0, kind: input, shape index: {}]   ;;  %s431_s1 = inlined_call_operand.hbm [shape: f32[32,128], index: 1, kind: input, shape index: {}]   ;;  %s432_s2 = inlined_call_operand.vmem [shape: f32[1,128], index: 2, kind: input, shape index: {}]   ;;  %s433_s3 = inlined_call_operand.hbm [shape: f32[8,128], index: 3, kind: output, shape index: {}]  }
   0x1   :  { %9 = vsyncpa [#allocation6], 0 }
   0x2   :  { %10 = vsyncpa [#allocation4], 0  ;;  %s16_s14 = sshll.u32 %s430_s0, 4  ;;  %s393_s15 = smov [#allocation2]   ;;  %s17_s14 = int_to_ptr.hbm [resolvable:$true] %s16_s14 }
   0x3   :  { %s18_s16 = sshll.u32 %s393_s15, 4  ;;  %s26_s19 = sshll.u32 %s431_s1, 4  ;;  %s19_s16 = int_to_ptr.vmem [resolvable:$true] %s18_s16  ;;  %s27_s19 = int_to_ptr.hbm [resolvable:$true] %s26_s19 }
   0x4   :  { %21 = dma.hbm_to_vmem [thread:$0]  %s17_s14, 128, %s19_s16, [#allocation3]  }
   0x5   :  { %s394_s20 = smov [#allocation5]   ;;  %s395_s22 = smov 128  }
   0x6   :  { %s28_s21 = sshll.u32 %s394_s20, 4  ;;  %s396_s23 = smov 8   ;;  %s29_s21 = int_to_ptr.vmem [resolvable:$true] %s28_s21 }
   0x7   :  { %34 = dma.hbm_to_vmem [thread:$0]  %s27_s19, 512, %s29_s21, [#allocation6], %s395_s22, %s395_s22, %s396_s23  }
   0x8   :  { %387 = dma.done.wait [#allocation3], 128  }
   0x9   :  { %388 = vsyncadd [#allocation3], 4294967168 }
   0xa   :  { %389 = dma.done.wait [#allocation6], 512  }
   0xb   :  { %390 = vsyncadd [#allocation6], 4294966784  ;;  %vm54_vm0 = vcmask 261120   ;;  %v49_v0 = vld [vmem:[#allocation5 + $0x18] sm:$0xff]  ;;  %v48_v1 = vld [vmem:[#allocation5 + $0x10] sm:$0xff]  ;;  %s295_s27 = sshll.u32 %s433_s3, 4  ;;  %s296_s27 = int_to_ptr.hbm [resolvable:$true] %s295_s27 }
   0xc   :  { %v47_v2 = vld [vmem:[#allocation5 + $0x8] sm:$0xff]  ;;  %v70_v3 = vand.u32 4294901760, %v49_v0  ;;  %v72_v4 = vand.u32 4294901760, %v48_v1  ;;  %v46_v6 = vld [vmem:[#allocation5] sm:$0xff]  ;;  %v45_v7 = vld [vmem:[#allocation2] sm:$0xff] }
   0xd   :  { %v74_v5 = vand.u32 4294901760, %v47_v2  ;;  %v76_v8 = vand.u32 4294901760, %v46_v6  ;;  %v56_v9 = vsel %vm54_vm0, %v45_v7, 0  ;;  %v312_v31 = vld [vmem:[%s432_s2] ss:$0 sm:$0xff]  ;;  %s397_s2 = smov [#allocation7]  }
   0xe   :  { %v100_v10 = vsub.f32 %v49_v0, %v70_v3  ;;  %71 = vmatpush.msra.mxu0 %v70_v3  ;;  %v106_v11 = vsub.f32 %v48_v1, %v72_v4  ;;  %171 = vmatpush.msra.mxu3 %v70_v3  ;;  %v78_v13 = vand.u32 4294901760, %v56_v9  ;;  %s293_s24 = sshll.u32 %s397_s2, 4  ;;  %s294_s24 = int_to_ptr.vmem [resolvable:$true] %s293_s24 }
   0xf   :  { %v112_v12 = vsub.f32 %v47_v2, %v74_v5  ;;  %v118_v14 = vsub.f32 %v46_v6, %v76_v8 }
  0x10   :  { %142 = vmatpush.msra.mxu2 %v100_v10  ;;  %73 = vmatpush.msra.mxu0 %v72_v4  ;;  %v101_v15 = vand.u32 4294901760, %v100_v10  ;;  %v107_v16 = vand.u32 4294901760, %v106_v11  ;;  %v79_v17 = vsub.f32 %v56_v9, %v78_v13 }
  0x11   :  { %v113_v18 = vand.u32 4294901760, %v112_v12  ;;  %173 = vmatpush.msra.mxu3 %v72_v4  ;;  %v119_v19 = vand.u32 4294901760, %v118_v14 }
  0x12   :  { %145 = vmatpush.msra.mxu2 %v106_v11  ;;  %v102_v20 = vsub.f32 %v100_v10, %v101_v15  ;;  %75 = vmatpush.msra.mxu0 %v74_v5  ;;  %v108_v21 = vsub.f32 %v106_v11, %v107_v16  ;;  %v80_v23 = vand.u32 4294901760, %v79_v17 }
  0x13   :  { %v114_v22 = vsub.f32 %v112_v12, %v113_v18  ;;  %175 = vmatpush.msra.mxu3 %v74_v5  ;;  %v120_v27 = vsub.f32 %v118_v14, %v119_v19 }
  0x14   :  { %v103_v24 = vand.u32 4294901760, %v102_v20  ;;  %148 = vmatpush.msra.mxu2 %v112_v12  ;;  %v109_v25 = vand.u32 4294901760, %v108_v21  ;;  %77 = vmatpush.msra.mxu0 %v76_v8  ;;  %v81_v26 = vsub.f32 %v79_v17, %v80_v23 }
  0x15   :  { %177 = vmatpush.msra.mxu3 %v76_v8  ;;  %v115_v28 = vand.u32 4294901760, %v114_v22  ;;  %v121_v30 = vand.u32 4294901760, %v120_v27 }
  0x16   :  { %200 = vmatpush.msrb.mxu0 %v101_v15  ;;  %104 = vmatpush.msra.mxu1 %v103_v24  ;;  %v82_v29 = vand.u32 4294901760, %v81_v26 }
  0x17   :  { %151 = vmatpush.msra.mxu2 %v118_v14  ;;  %181 = vmatmul.f32.vlgmr.msra.gmra.mxu3 %v80_v23 }
  0x18   :  { %154 = vmatmul.f32.vlgmr.msra.gmra.mxu2 %v79_v17  ;;  %110 = vmatpush.msra.mxu1 %v109_v25 }
  0x19   :  { %83 = vmatmul.f32.vlgmr.msra.gmra.mxu0 %v82_v29 }
  0x1a   :  { %204 = vmatpush.msrb.mxu0 %v107_v16  ;;  %116 = vmatpush.msra.mxu1 %v115_v28 }
  0x1c   :  { %208 = vmatpush.msrb.mxu0 %v113_v18  ;;  %122 = vmatpush.msra.mxu1 %v121_v30 }
  0x1d   :  { %124 = vmatmul.f32.vlgmr.msra.gmra.mxu1 %v78_v13 }
  0x1e   :  { %212 = vmatpush.msrb.mxu0 %v119_v19  ;;  %231 = vmatpush.msrb.mxu1 %v70_v3 }
  0x20   :  { %233 = vmatpush.msrb.mxu1 %v72_v4 }
  0x21   :  { %214 = vmatmul.f32.vlgmr.msrb.gmra.mxu0 %v78_v13 }
  0x22   :  { %235 = vmatpush.msrb.mxu1 %v74_v5 }
  0x24   :  { %237 = vmatpush.msrb.mxu1 %v76_v8 }
  0x25   :  { %239 = vmatmul.f32.vlgmr.msrb.gmra.mxu1 %v78_v13 }
  0x96   :  { %v84_v32 = vpop.f32.mrf.mxu0 }
  0x97   :  { %v85_v33 = vadd.f32 %v312_v31, %v84_v32 }
  0x9a   :  { %v125_v34 = vpop.f32.mrf.mxu1  ;;  %v182_v37 = vpop.f32.mrf.mxu3 }
  0x9b   :  { %v155_v35 = vpop.f32.mrf.mxu2  ;;  %v126_v36 = vadd.f32 %v125_v34, %v85_v33 }
  0x9d   :  { %v156_v38 = vadd.f32 %v155_v35, %v126_v36 }
  0x9e   :  { %v215_v39 = vpop.f32.mrf.mxu0 }
  0x9f   :  { %v183_v40 = vadd.f32 %v182_v37, %v156_v38 }
  0xa1   :  { %v216_v41 = vadd.f32 %v215_v39, %v183_v40 }
  0xa2   :  { %v240_v42 = vpop.f32.mrf.mxu1 }
  0xa3   :  { %v241_v43 = vadd.f32 %v240_v42, %v216_v41 }
  0xa5   :  { %v244_v44 = vmul.f32 0.70710677, %v241_v43  ;;  %v243_v16 = vmul.f32 0.5, %v241_v43 }
  0xa7   :  { %v245_v45 = vmul.f32 %v244_v44, %v244_v44 }
  0xa9   :  { %v246_v46 = vmin.f32 %v245_v45, 16.0 }
  0xab   :  { %v247_v47 = vmul.f32 2.1237322e-06, %v246_v46  ;;  %v258_v48 = vmul.f32 3.8918573e-05, %v246_v46 }
  0xad   :  { %v248_v49 = vadd.f32 0.00028619796, %v247_v47  ;;  %v259_v50 = vadd.f32 0.001143296, %v258_v48 }
  0xaf   :  { %v249_v51 = vmul.f32 %v248_v49, %v246_v46  ;;  %v260_v52 = vmul.f32 %v259_v50, %v246_v46 }
  0xb1   :  { %v261_v53 = vadd.f32 0.014752088, %v260_v52  ;;  %v250_v54 = vadd.f32 0.0036580483, %v249_v51 }
  0xb3   :  { %v262_v55 = vmul.f32 %v261_v53, %v246_v46  ;;  %v251_v57 = vmul.f32 %v250_v54, %v246_v46 }
  0xb5   :  { %v263_v56 = vadd.f32 0.112945676, %v262_v55  ;;  %v252_v60 = vadd.f32 0.05243302, %v251_v57 }
  0xb7   :  { %v264_v58 = vmul.f32 %v263_v56, %v246_v46  ;;  %v253_v63 = vmul.f32 %v252_v60, %v246_v46 }
  0xb9   :  { %v265_v59 = vadd.f32 0.4994258, %v264_v58  ;;  %v254_v0 = vadd.f32 0.18741608, %v253_v63 }
  0xbb   :  { %v266_v61 = vmul.f32 %v265_v59, %v246_v46  ;;  %v255_v2 = vmul.f32 %v254_v0, %v246_v46 }
  0xbd   :  { %v267_v62 = vadd.f32 1.0, %v266_v61  ;;  %v256_v6 = vadd.f32 1.1283791, %v255_v2 }
  0xbf   :  { %313 = vrcp.f32 %v267_v62  ;;  %v279_v5 = vand.u32 2147483648, %v267_v62  ;;  %v277_v8 = vand.u32 2147483647, %v267_v62  ;;  %vm273_vm2 = vweird.f32 %v267_v62 }
  0xc0   :  { %v257_v11 = vmul.f32 %v256_v6, %v244_v44 }
  0xc1   :  { %v280_v10 = vor.u32 1.1754944e-38, %v279_v5  ;;  %vm278_vm4 = vcmp.eq.f32.partialorder %v277_v8, 8.507059e+37 }
  0xc5   :  { %v314_v1 = vpop.eup %313 }
  0xc6   :  { %v269_v3 = vmul.f32 %v314_v1, %v267_v62  ;;  %vm274_vm1 = vweird.f32 %v314_v1 }
  0xc7   :  { %vm275_vm3 = vmor %vm273_vm2, %vm274_vm1 }
  0xc8   :  { %v270_v4 = vsub.f32 1.0, %v269_v3 }
  0xca   :  { %v271_v7 = vmul.f32 %v314_v1, %v270_v4 }
  0xcc   :  { %v272_v9 = vadd.f32 %v314_v1, %v271_v7 }
  0xce   :  { %v276_v12 = vsel %vm275_vm3, %v314_v1, %v272_v9 }
  0xcf   :  { %v281_v13 = vsel %vm278_vm4, %v280_v10, %v276_v12 }
  0xd0   :  { %v282_v14 = vmul.f32 %v281_v13, %v257_v11 }
  0xd2   :  { %v306_v15 = vclamps-f32 %v282_v14, 1.0 }
  0xd4   :  { %v285_v17 = vadd.f32 1.0, %v306_v15 }
  0xd6   :  { %v286_v18 = vmul.f32 %v285_v17, %v243_v16 }
  0xd8   :  { %287 = vst [vmem:[#allocation7] sm:$0xff] %v286_v18 }
  0xd9   :  { %298 = dma.vmem_to_hbm [thread:$0]  %s294_s24, 128, %s296_s27, [#allocation4]  }
  0xda   :  { %391 = dma.done.wait [#allocation4], 128  }
  0xdb   :  { %392 = vsyncadd [#allocation4], 4294967168 }
  0xdc   :  { %303 = vsyncpa [#allocation3], 1 }
  0xdd   :  { %304 = vsyncpa [#allocation6], 1 }
  0xde   :  { %305 = vsyncpa [#allocation4], 1 }

</bundles_post_ra>
